<compile_context>
chip_gen: v7x
topology: tpu7x:2x2x1
jax: 0.10.0
libtpu: 0.0.40
codegen_flags: <defaults>
</compile_context>

<pallas_src>
import functools

import jax
import jax.numpy as jnp
from jax.experimental import pallas as pl
from jax.experimental.pallas import tpu as pltpu


def _vmem_limit_bytes():
    """~3/4 of chip VMEM (≈96 MiB on v5e/v6e, ≈48 MiB on v7x)."""
    try:
        cap = int(pltpu.get_tpu_info().vmem_capacity_bytes)
    except Exception:
        cap = 64 * 1024 * 1024
    return min((cap * 3) // 4, 100 * 1024 * 1024)


def _round_up(x, m):
    return -(-x // m) * m


def _row_tiling(m):
    """Return (padded_rows, row_tile): row_tile divides padded_rows and blocks are
    either (8,128)-friendly or span the full array (no huge-fallback-block trap)."""
    for c in (512, 256, 128):
        if m % c == 0:
            return m, c
    if m <= 1024:
        return m, m                       # single block == full array (allowed)
    m_pad = _round_up(m, 128)
    return m_pad, (256 if m_pad % 256 == 0 else 128)


# ----------------------------------------------------------------------------
# Stage 1: fused input projection for both directions (single GEMM).
# ----------------------------------------------------------------------------
def _input_proj_kernel(x_ref, w_ref, b_ref, o_ref):
    acc = jnp.dot(x_ref[...], w_ref[...], preferred_element_type=jnp.float32)
    o_ref[...] = (acc + b_ref[...]).astype(o_ref.dtype)


def input_proj_pallas(x2d, w_cat, bias, tm):
    """x2d: [M, D] bf16; w_cat: [D, 8H] bf16; bias: [1, 8H] f32 -> gx [M, 8H] bf16."""
    M, D = x2d.shape
    G = w_cat.shape[1]
    return pl.pallas_call(
        _input_proj_kernel,
        out_shape=jax.ShapeDtypeStruct((M, G), jnp.bfloat16),
        grid=(M // tm,),
        in_specs=[
            pl.BlockSpec((tm, D), lambda m: (m, 0)),
            pl.BlockSpec((D, G), lambda m: (0, 0)),
            pl.BlockSpec((1, G), lambda m: (0, 0)),
        ],
        out_specs=pl.BlockSpec((tm, G), lambda m: (m, 0)),
        compiler_params=pltpu.CompilerParams(
            dimension_semantics=("parallel",),
            vmem_limit_bytes=_vmem_limit_bytes()),
    )(x2d, w_cat, bias)


# ----------------------------------------------------------------------------
# Stage 2: sequential recurrence, both directions interleaved in one kernel.
# ----------------------------------------------------------------------------
def _recurrence_kernel(T, H, gx_ref, w_hh_ref, h_out_ref):
    """gx_ref:   [T, B, 8H] bf16, columns = [fwd (i,f,o,g) | rev (i,f,o,g)]
       w_hh_ref: [2, H, 4H] bf16, gate columns (i,f,o,g)
       h_out_ref:[T, B, 2H] bf16, columns = [h_fwd | h_rev]"""
    B = gx_ref.shape[1]
    bf16 = jnp.bfloat16

    def step(t, carry):
        hf, cf, hr, cr = carry                                  # [B, H] f32 each
        tr = T - 1 - t
        # Two independent small matmuls per step: the LLO scheduler overlaps one
        # direction's MXU push with the other's VPU/EUP elementwise.
        gf = (gx_ref[t, :, :4 * H].astype(jnp.float32)
              + jnp.dot(hf.astype(bf16), w_hh_ref[0],
                        preferred_element_type=jnp.float32))
        gr = (gx_ref[tr, :, 4 * H:].astype(jnp.float32)
              + jnp.dot(hr.astype(bf16), w_hh_ref[1],
                        preferred_element_type=jnp.float32))
        # Gate order (i, f, o, g): sigmoid only over the first 3H columns.
        sf = jax.nn.sigmoid(gf[:, :3 * H])
        sr = jax.nn.sigmoid(gr[:, :3 * H])
        cf_n = sf[:, H:2 * H] * cf + sf[:, :H] * jnp.tanh(gf[:, 3 * H:])
        cr_n = sr[:, H:2 * H] * cr + sr[:, :H] * jnp.tanh(gr[:, 3 * H:])
        hf_n = sf[:, 2 * H:] * jnp.tanh(cf_n)
        hr_n = sr[:, 2 * H:] * jnp.tanh(cr_n)
        h_out_ref[t, :, :H] = hf_n.astype(h_out_ref.dtype)     # stays in VMEM
        h_out_ref[tr, :, H:] = hr_n.astype(h_out_ref.dtype)
        return (hf_n, cf_n, hr_n, cr_n)

    z = jnp.zeros((B, H), jnp.float32)
    jax.lax.fori_loop(0, T, step, (z, z, z, z),
                      unroll=(T if T <= 16 else 4))


def bilstm_recurrence_pallas(gx, w_hh):
    """gx: [T, B, 8H] bf16; w_hh: [2, H, 4H] bf16 -> h_all: [T, B, 2H] bf16."""
    T, B, _ = gx.shape
    H = w_hh.shape[1]
    kernel = functools.partial(_recurrence_kernel, T, H)
    # No grid: gx, w_hh and the output slab are single-buffered VMEM residents for the
    # whole sweep (no double-buffering of the big slab, no per-step HBM traffic).
    # TODO(synk): for very long T*B*H that exceeds VMEM (esp. v7x 64 MiB/TC), keep gx in
    #   HBM (memory_space=pl.ANY) and manually double-buffer T-chunks; on v7x the two
    #   directions could also be split across the two TensorCores again.
    # TODO(synk): larger follow-up — fuse stage 1 into this kernel (compute chunk k+1's
    #   x@w_ih on the idle MXU while chunk k's recurrence runs) to drop the gx round trip.
    return pl.pallas_call(
        kernel,
        out_shape=jax.ShapeDtypeStruct((T, B, 2 * H), jnp.bfloat16),
        compiler_params=pltpu.CompilerParams(
            vmem_limit_bytes=_vmem_limit_bytes()),
    )(gx, w_hh)


# ----------------------------------------------------------------------------
# Stage 3: output linear (single GEMM over the [h_fwd | h_rev] hidden slab).
# ----------------------------------------------------------------------------
def _linear_kernel(h_ref, w_ref, b_ref, o_ref):
    acc = jnp.dot(h_ref[...], w_ref[...], preferred_element_type=jnp.float32)
    o_ref[...] = (acc + b_ref[...]).astype(o_ref.dtype)


def linear_pallas(h2d, w, b, tm):
    """h2d: [M, 2H] bf16; w: [2H, Opad] bf16; b: [1, Opad] f32 -> [M, Opad] f32."""
    M, H2 = h2d.shape
    Opad = w.shape[1]
    return pl.pallas_call(
        _linear_kernel,
        out_shape=jax.ShapeDtypeStruct((M, Opad), jnp.float32),
        grid=(M // tm,),
        in_specs=[
            pl.BlockSpec((tm, H2), lambda m: (m, 0)),
            pl.BlockSpec((H2, Opad), lambda m: (0, 0)),
            pl.BlockSpec((1, Opad), lambda m: (0, 0)),
        ],
        out_specs=pl.BlockSpec((tm, Opad), lambda m: (m, 0)),
        compiler_params=pltpu.CompilerParams(
            dimension_semantics=("parallel",),
            vmem_limit_bytes=_vmem_limit_bytes()),
    )(h2d, w, b)


# ----------------------------------------------------------------------------
# Module wrapper (parameter setup + layout glue in plain JAX).
# ----------------------------------------------------------------------------
def _permute_gates(w, H):
    """Reorder last-axis gate blocks from torch's (i, f, g, o) to (i, f, o, g)."""
    return jnp.concatenate(
        [w[..., 0:H], w[..., H:2 * H], w[..., 3 * H:4 * H], w[..., 2 * H:3 * H]],
        axis=-1)


def init_params(key, input_size, hidden_size, output_size):
    H, D, O = hidden_size, input_size, output_size
    k = 1.0 / jnp.sqrt(jnp.float32(H))
    keys = jax.random.split(key, 10)
    u = lambda kk, shape, bound: jax.random.uniform(
        kk, shape, jnp.float32, -bound, bound)
    return {
        # PyTorch nn.LSTM parameter shapes (gate order i, f, g, o).
        "w_ih_f": u(keys[0], (4 * H, D), k), "w_hh_f": u(keys[1], (4 * H, H), k),
        "b_ih_f": u(keys[2], (4 * H,), k),   "b_hh_f": u(keys[3], (4 * H,), k),
        "w_ih_r": u(keys[4], (4 * H, D), k), "w_hh_r": u(keys[5], (4 * H, H), k),
        "b_ih_r": u(keys[6], (4 * H,), k),   "b_hh_r": u(keys[7], (4 * H,), k),
        # nn.Linear(2H, O)
        "w_lin": u(keys[8], (O, 2 * H), 1.0 / jnp.sqrt(jnp.float32(2 * H))),
        "b_lin": u(keys[9], (O,), 1.0 / jnp.sqrt(jnp.float32(2 * H))),
    }


def bidirectional_lstm_forward(x_btd, params):
    """x_btd: [B, T, input_size] -> [B, T, output_size]  (matches PyTorch)."""
    B, T, D = x_btd.shape
    H = params["w_hh_f"].shape[1]
    O = params["w_lin"].shape[0]
    bf16 = jnp.bfloat16
    perm = functools.partial(_permute_gates, H=H)

    # Fused, pre-transposed weights (gate order (i,f,o,g) per direction).
    w_cat = jnp.concatenate(
        [perm(params["w_ih_f"].T), perm(params["w_ih_r"].T)], axis=1).astype(bf16)  # [D, 8H]
    b_cat = jnp.concatenate(
        [perm(params["b_ih_f"] + params["b_hh_f"]),
         perm(params["b_ih_r"] + params["b_hh_r"])]
    ).reshape(1, 8 * H).astype(jnp.float32)                                          # [1, 8H]
    w_hh = jnp.stack(
        [perm(params["w_hh_f"].T), perm(params["w_hh_r"].T)]).astype(bf16)           # [2, H, 4H]

    # Time-major flat input so stage 1 is a single GEMM.
    # TODO(synk): absorb this transpose (and the final [T,B,O]->[B,T,O] one) into the
    # stage-1 / stage-3 BlockSpec index maps to save the extra HBM round trips.
    x2d = jnp.transpose(x_btd, (1, 0, 2)).astype(bf16).reshape(T * B, D)

    M = T * B
    M_pad, tm = _row_tiling(M)
    if M_pad != M:
        x2d = jnp.pad(x2d, ((0, M_pad - M), (0, 0)))

    gx = input_proj_pallas(x2d, w_cat, b_cat, tm)            # [M_pad, 8H] bf16
    if M_pad != M:
        gx = gx[:M]
    gx = gx.reshape(T, B, 8 * H)

    h_all = bilstm_recurrence_pallas(gx, w_hh)               # [T, B, 2H] bf16

    h2d = h_all.reshape(M, 2 * H)
    if M_pad != M:
        h2d = jnp.pad(h2d, ((0, M_pad - M), (0, 0)))

    # Lane-dense output: pad O up to a multiple of 128, slice back afterwards.
    O_pad = _round_up(O, 128)
    w_lin_t = params["w_lin"].T.astype(bf16)                 # [2H, O]
    b_lin = params["b_lin"].astype(jnp.float32)
    if O_pad != O:
        w_lin_t = jnp.pad(w_lin_t, ((0, 0), (0, O_pad - O)))
        b_lin = jnp.pad(b_lin, ((0, O_pad - O),))
    b_lin = b_lin.reshape(1, O_pad)

    out2d = linear_pallas(h2d, w_lin_t, b_lin, tm)           # [M_pad, O_pad] f32
    out = out2d[:M, :O].reshape(T, B, O)
    return jnp.transpose(out, (1, 0, 2))                     # [B, T, O]


# ----------------------------------------------------------------------------
# Pure-JAX reference (mirrors torch semantics and the kernel's bf16 casts).
# ----------------------------------------------------------------------------
def _lstm_ref_dir(x_btd, w_ih, w_hh, b_ih, b_hh, H):
    """x_btd: [B,T,D] f32; torch-shaped weights; gate order (i,f,g,o)."""
    B = x_btd.shape[0]
    bf16 = jnp.bfloat16
    w_ih_t = w_ih.T.astype(bf16)                                   # [D, 4H]
    w_hh_t = w_hh.T.astype(bf16)                                   # [H, 4H]
    b = (b_ih + b_hh).astype(jnp.float32)
    xs = jnp.transpose(x_btd, (1, 0, 2)).astype(bf16)              # [T, B, D]
    # Mirror the kernel's bf16 gx intermediate.
    gx = (jnp.dot(xs, w_ih_t, preferred_element_type=jnp.float32) + b).astype(bf16)

    def cell(carry, gx_t):
        h, c = carry
        gates = gx_t.astype(jnp.float32) + jnp.dot(
            h.astype(bf16), w_hh_t, preferred_element_type=jnp.float32)
        i = jax.nn.sigmoid(gates[:, 0 * H:1 * H])
        f = jax.nn.sigmoid(gates[:, 1 * H:2 * H])
        g = jnp.tanh(gates[:, 2 * H:3 * H])
        o = jax.nn.sigmoid(gates[:, 3 * H:4 * H])
        c = f * c + i * g
        h = o * jnp.tanh(c)
        return (h, c), h

    init = (jnp.zeros((B, H), jnp.float32), jnp.zeros((B, H), jnp.float32))
    _, hs = jax.lax.scan(cell, init, gx)
    return jnp.transpose(hs, (1, 0, 2))                            # [B, T, H] f32


def reference_forward(x, params):
    H = params["w_hh_f"].shape[1]
    bf16 = jnp.bfloat16
    fwd = _lstm_ref_dir(x, params["w_ih_f"], params["w_hh_f"],
                        params["b_ih_f"], params["b_hh_f"], H)
    rev = _lstm_ref_dir(x[:, ::-1], params["w_ih_r"], params["w_hh_r"],
                        params["b_ih_r"], params["b_hh_r"], H)[:, ::-1]
    rec = jnp.concatenate([fwd, rev], axis=-1).astype(bf16)        # [B, T, 2H]
    return (jnp.dot(rec, params["w_lin"].T.astype(bf16),
                    preferred_element_type=jnp.float32)
            + params["b_lin"].astype(jnp.float32))


if __name__ == "__main__":
    B, T, INPUT_SIZE, HIDDEN_SIZE, OUTPUT_SIZE = 2, 8, 16, 32, 16

    key = jax.random.PRNGKey(0)
    kx, kp = jax.random.split(key)
    x = jax.random.normal(kx, (B, T, INPUT_SIZE), jnp.float32)
    params = init_params(kp, INPUT_SIZE, HIDDEN_SIZE, OUTPUT_SIZE)

    out = bidirectional_lstm_forward(x, params)
    out = jax.block_until_ready(out)

    ref = reference_forward(x, params)
    assert out.shape == (B, T, OUTPUT_SIZE), out.shape
    max_err = float(jnp.max(jnp.abs(out - ref)))
    assert jnp.allclose(out, ref, atol=2e-3, rtol=2e-3), max_err

    print("KERNEL_OK")
</pallas_src>

<mosaic_0001>
module attributes {stable_mosaic.version = 11 : i64} {
  func.func @_input_proj_kernel(%arg0: i32, %arg1: memref<16x16xbf16, #tpu.memory_space<vmem>>, %arg2: memref<16x256xbf16, #tpu.memory_space<vmem>>, %arg3: memref<1x256xf32, #tpu.memory_space<vmem>>, %arg4: memref<16x256xbf16, #tpu.memory_space<vmem>>) attributes {dimension_semantics = [#tpu.dimension_semantics<parallel>], iteration_bounds = array<i64: 1>, scalar_prefetch = 0 : i64, scratch_operands = 0 : i64, tpu.core_type = #tpu.core_type<tc>, window_params = [{transform_indices = @transform_0, window_bounds = array<i64: 16, 16>}, {pipeline_mode = #tpu.pipeline_mode<synchronous>, transform_indices = @transform_1, window_bounds = array<i64: 16, 256>}, {pipeline_mode = #tpu.pipeline_mode<synchronous>, transform_indices = @transform_2, window_bounds = array<i64: 1, 256>}, {transform_indices = @transform_3, window_bounds = array<i64: 16, 256>}]} {
    %c0 = arith.constant 0 : index
    %c0_0 = arith.constant 0 : index
    %0 = vector.load %arg1[%c0, %c0_0] : memref<16x16xbf16, #tpu.memory_space<vmem>>, vector<16x16xbf16>
    %c0_1 = arith.constant 0 : index
    %c0_2 = arith.constant 0 : index
    %1 = vector.load %arg2[%c0_1, %c0_2] : memref<16x256xbf16, #tpu.memory_space<vmem>>, vector<16x256xbf16>
    %cst = arith.constant dense<0.000000e+00> : vector<16x256xf32>
    %2 = tpu.matmul %0, %1, %cst {dimension_numbers = #tpu.dot_dimension_numbers<[1], [0], [0], [1], [0, 0, 1, 1], [], []>} : vector<16x16xbf16>, vector<16x256xbf16>, vector<16x256xf32> -> vector<16x256xf32>
    %c0_3 = arith.constant 0 : index
    %c0_4 = arith.constant 0 : index
    %3 = vector.load %arg3[%c0_3, %c0_4] : memref<1x256xf32, #tpu.memory_space<vmem>>, vector<1x256xf32>
    %4 = vector.broadcast %3 : vector<1x256xf32> to vector<16x256xf32>
    %5 = arith.addf %2, %4 : vector<16x256xf32>
    %6 = arith.truncf %5 : vector<16x256xf32> to vector<16x256xbf16>
    %c0_5 = arith.constant 0 : index
    %c0_6 = arith.constant 0 : index
    %7 = vector.load %arg4[%c0_5, %c0_6] : memref<16x256xbf16, #tpu.memory_space<vmem>>, vector<16x256xbf16>
    tpu.vector_store %arg4[%c0_5, %c0_6], %6 {strides = array<i32>} : memref<16x256xbf16, #tpu.memory_space<vmem>>, vector<16x256xbf16>,
    return
  }
  func.func @transform_0(%arg0: i32) -> (i32, i32) {
    %c0_i32 = arith.constant 0 : i32
    %c0_i32_0 = arith.constant 0 : i32
    return %arg0, %c0_i32 : i32, i32
  }
  func.func @transform_1(%arg0: i32) -> (i32, i32) {
    %c0_i32 = arith.constant 0 : i32
    %c0_i32_0 = arith.constant 0 : i32
    %c0_i32_1 = arith.constant 0 : i32
    return %c0_i32, %c0_i32_0 : i32, i32
  }
  func.func @transform_2(%arg0: i32) -> (i32, i32) {
    %c0_i32 = arith.constant 0 : i32
    %c0_i32_0 = arith.constant 0 : i32
    %c0_i32_1 = arith.constant 0 : i32
    return %c0_i32, %c0_i32_0 : i32, i32
  }
  func.func @transform_3(%arg0: i32) -> (i32, i32) {
    %c0_i32 = arith.constant 0 : i32
    %c0_i32_0 = arith.constant 0 : i32
    return %arg0, %c0_i32 : i32, i32
  }
}

</mosaic_0001>

<bundles_post_ra>
// kernel: tpu_custom_call.1
= control target key start
LH: loop header
LB: loop body
LE: loop exit
PB: predicated region body
PF: predicated region fallthrough
CT: control target
= control target key end

     0   :  { %8 = vsyncpa [#allocation3], 0  ;;  %s319_s0 = inlined_call_operand.hbm [shape: bf16[16,16], index: 0, kind: input, shape index: {}]   ;;  %s320_s1 = inlined_call_operand.hbm [shape: bf16[16,256], index: 1, kind: input, shape index: {}]   ;;  %s321_s2 = inlined_call_operand.vmem [shape: f32[1,256], index: 2, kind: input, shape index: {}]   ;;  %s322_s3 = inlined_call_operand.hbm [shape: bf16[16,256], index: 3, kind: output, shape index: {}]  }
   0x1   :  { %9 = vsyncpa [#allocation6], 0 }
   0x2   :  { %10 = vsyncpa [#allocation4], 0  ;;  %s246_s12 = smov [#allocation2]   ;;  %s174_s16 = scalar_lea.hbm %s319_s0, 128 }
   0x3   :  { %s16_s13 = sshll.u32 %s246_s12, 4  ;;  %p175_p0 = scmp.ne.s32.totalorder %s319_s0, %s174_s16  ;;  %s17_s13 = int_to_ptr.vmem [resolvable:$true] %s16_s13 }
   0x4   :  { %p178_p1 = scmp.lt.u32.totalorder %s174_s16, %s319_s0 }
   0x6   :  { %p180_p2 = pnand %p178_p1, %p175_p0 }
   0x8   :  { %183 = shalt.err (!%p180_p2)
}
   0x9   :  { %s184_s21 = scalar_lea.vmem %s17_s13, 128  ;;  %p189_p4 = scmp.lt.s32.totalorder %s17_s13, %s17_s13 }
   0xa   :  { %p185_p3 = scmp.ne.s32.totalorder %s17_s13, %s184_s21  ;;  %p190_p5 = scmp.lt.s32.totalorder %s184_s21, %s184_s21 }
   0xc   :  { %p191_p6 = por %p190_p5, %p189_p4 }
   0xe   :  { %p192_p7 = pnand %p191_p6, %p185_p3 }
  0x10   :  { %195 = shalt.err (!%p192_p7)
}
  0x11   :  { %s247_s22 = smov 64   ;;  %s248_s23 = smov 4  }
  0x12   :  { %22 = dma.hbm_to_vmem [thread:$0]  %s319_s0, 128, %s17_s13, [#allocation3], %s247_s22, %s247_s22, %s248_s23  }
  0x13   :  { %s249_s26 = smov [#allocation5]   ;;  %s196_s30 = scalar_lea.hbm %s320_s1, 256 }
  0x14   :  { %s28_s27 = sshll.u32 %s249_s26, 4  ;;  %p197_p8 = scmp.ne.s32.totalorder %s320_s1, %s196_s30  ;;  %s29_s27 = int_to_ptr.vmem [resolvable:$true] %s28_s27 }
  0x15   :  { %p200_p9 = scmp.lt.u32.totalorder %s196_s30, %s320_s1 }
  0x17   :  { %p202_p10 = pnand %p200_p9, %p197_p8 }
  0x19   :  { %205 = shalt.err (!%p202_p10)
}
  0x1a   :  { %s206_s8 = scalar_lea.vmem %s29_s27, 256  ;;  %p211_p12 = scmp.lt.s32.totalorder %s29_s27, %s29_s27 }
  0x1b   :  { %p207_p11 = scmp.ne.s32.totalorder %s29_s27, %s206_s8  ;;  %p212_p13 = scmp.lt.s32.totalorder %s206_s8, %s206_s8 }
  0x1d   :  { %p213_p0 = por %p212_p13, %p211_p12 }
  0x1f   :  { %p214_p1 = pnand %p213_p0, %p207_p11 }
  0x21   :  { %217 = shalt.err (!%p214_p1)
}
  0x22   :  { %s250_s0 = smov 128   ;;  %s251_s9 = smov 8  }
  0x23   :  { %34 = dma.hbm_to_vmem [thread:$0]  %s320_s1, 256, %s29_s27, [#allocation6], %s250_s0, %s250_s0, %s251_s9  }
  0x24   :  { %240 = dma.done.wait [#allocation3], 128  }
  0x25   :  { %241 = vsyncadd [#allocation3], 4294967168 }
  0x26   :  { %242 = dma.done.wait [#allocation6], 256  }
  0x27   :  { %243 = vsyncadd [#allocation6], 4294967040  ;;  %v252_v0 = vmov 0   ;;  %v170_v1 = vld [vmem:[#allocation5 + $0x4] ss:$8 sps:$4 sm:$0xff]   ;;  %v173_v3 = vld [vmem:[#allocation2] sm:$0xff]   ;;  %v50_v4 = vlaneseq }
  0x28   :  { %111 = vmatprep.mubr.bf16.mxu0 %v252_v0  ;;  %v172_v2 = vld [vmem:[#allocation5] ss:$8 sps:$4 sm:$0xff]   ;;  %79 = vmatprep.subr.bf16.mxu0 %v170_v1  ;;  %vm75_vm0 = vcmask 130048   ;;  %v48_v7 = vld [vmem:[%s321_s2] sm:$0x3]  ;;  %s253_s1 = smov [#allocation7]  }
  0x29   :  { %80 = vmatpush1.bf16.msra.mxu0 %v172_v2  ;;  %v51_v5 = vshrl.u32 %v50_v4, 7  ;;  %s141_s14 = sshll.u32 %s253_s1, 4  ;;  %s142_s14 = int_to_ptr.vmem [resolvable:$true] %s141_s14 }
  0x2a   :  { %s218_s15 = scalar_lea.vmem %s142_s14, 256  ;;  %p223_p3 = scmp.lt.s32.totalorder %s142_s14, %s142_s14 }
  0x2b   :  { %v52_v6 = vsub.s32 0, %v51_v5  ;;  %v56_v8 = vsub.s32 1, %v51_v5  ;;  %p219_p2 = scmp.ne.s32.totalorder %s142_s14, %s218_s15  ;;  %p224_p4 = scmp.lt.s32.totalorder %s218_s15, %s218_s15 }
  0x2c   :  { %157 = vmatmul.mubr.msk.bf16.vlgmr.msra.gmra.mrb[0].mxu0 %vm75_vm0, %v173_v3 }
  0x2d   :  { %v53_v9 = vrot.slane %v48_v7, %v52_v6  ;;  %v57_v10 = vrot.slane %v48_v7, %v56_v8  ;;  %p225_p5 = por %p224_p4, %p223_p3 }
  0x2f   :  { %p226_p6 = pnand %p225_p5, %p219_p2 }
  0xff   :  { %v113_v11 = vpop.f32.mrb[0].mxu0 }
 0x100   :  { %v114_v12 = vadd.f32 %v113_v11, %v53_v9  ;;  %v115_v13 = vpop.f32.mrb[1].mxu0 }
 0x101   :  { %v116_v14 = vadd.f32 %v115_v13, %v57_v10  ;;  %v117_v15 = vpop.f32.mrb[2].mxu0 }
 0x102   :  { %v118_v16 = vadd.f32 %v117_v15, %v53_v9  ;;  %v119_v17 = vpop.f32.mrb[3].mxu0 }
 0x103   :  { %v160_v18 = vpack.c.bf16 %v116_v14, %v114_v12  ;;  %v120_v19 = vadd.f32 %v119_v17, %v57_v10 }
 0x105   :  { %134 = vst [vmem:[#allocation7] sm:$0xff] %v160_v18  ;;  %v161_v20 = vpack.c.bf16 %v120_v19, %v118_v16 }
 0x107   :  { %135 = vst [vmem:[#allocation7 + $0x8] sm:$0xff] %v161_v20 }
 0x108   :  { %229 = shalt.err (!%p226_p6)
}
 0x109   :  { %s230_s17 = scalar_lea.hbm %s322_s3, 256 }
 0x10a   :  { %p231_p7 = scmp.ne.s32.totalorder %s322_s3, %s230_s17  ;;  %p234_p8 = scmp.lt.u32.totalorder %s230_s17, %s322_s3 }
 0x10c   :  { %p236_p9 = pnand %p234_p8, %p231_p7 }
 0x10e   :  { %239 = shalt.err (!%p236_p9)
}
 0x10f   :  { %147 = dma.vmem_to_hbm [thread:$0]  %s142_s14, 256, %s322_s3, [#allocation4], %s250_s0, %s250_s0, %s251_s9  }
 0x110   :  { %244 = dma.done.wait [#allocation4], 256  }
 0x111   :  { %245 = vsyncadd [#allocation4], 4294967040 }
 0x112   :  { %151 = vsyncpa [#allocation3], 1 }
 0x113   :  { %152 = vsyncpa [#allocation6], 1 }
 0x114   :  { %153 = vsyncpa [#allocation4], 1 }

</bundles_post_ra>
